<compile_context>
chip_gen: v7x
topology: tpu7x:2x2x1
jax: 0.10.0
libtpu: 0.0.40
codegen_flags: <defaults>
</compile_context>

<pallas_src>
import functools
import math

import jax
import jax.numpy as jnp
from jax.experimental import pallas as pl
from jax.experimental.pallas import tpu as pltpu


def _const_spec(block_shape, index_map):
    """BlockSpec for an operand whose block index never changes: single-buffer it."""
    if hasattr(pl, "Buffered"):
        try:
            return pl.BlockSpec(block_shape, index_map, pipeline_mode=pl.Buffered(1))
        except TypeError:
            pass
    return pl.BlockSpec(block_shape, index_map)


def _sublayer_wrapper_kernel(drop_p, eps, tile_rows, tile_cols, d_model, n_col_tiles,
                             seed_ref,                       # scalar prefetch (SMEM)
                             x_ref, w_ref, p_ref,            # inputs (VMEM tiles)
                             o_ref,                          # output (VMEM tile)
                             *scratch):                      # [acc] only when col-tiled
    i = pl.program_id(0)

    def apply_dropout(sub):
        # Counter-based dropout: keep probability (1-p), kept values scaled by 1/(1-p).
        # Randomness is a pure function of (seed, global element index) -> grid-order
        # independent.  Slimmed 2-round hash (3 vector multiplies total).
        if not (0.0 < drop_p < 1.0):
            return sub
        tr_, d_ = sub.shape
        row = jax.lax.broadcasted_iota(jnp.int32, (tr_, d_), 0)
        col = jax.lax.broadcasted_iota(jnp.int32, (tr_, d_), 1)
        grow = (row + i * tile_rows).astype(jnp.uint32)
        # TODO(synk): the uint32 element counter wraps for problems with >= 2^32 elements.
        gidx = grow * jnp.uint32(d_model) + col.astype(jnp.uint32)
        h = gidx ^ (seed_ref[0].astype(jnp.uint32) * jnp.uint32(0x9E3779B9))
        h = (h ^ (h >> 16)) * jnp.uint32(0x7FEB352D)
        h = (h ^ (h >> 15)) * jnp.uint32(0x846CA68B)
        h = h ^ (h >> 16)
        threshold = jnp.uint32(int(round(drop_p * (2.0 ** 32))))
        keep = h >= threshold
        return jnp.where(keep, sub * jnp.float32(1.0 / (1.0 - drop_p)), jnp.float32(0.0))

    def layernorm_store(resid):
        # f32 statistics; two-pass variance kept for numerical robustness (rsqrt runs on
        # the EUP slot; the VALU is no longer the binding unit after slimming the PRNG).
        mean = jnp.mean(resid, axis=-1, keepdims=True)
        var = jnp.mean((resid - mean) ** 2, axis=-1, keepdims=True)
        norm = (resid - mean) * jax.lax.rsqrt(var + jnp.float32(eps))
        gamma = p_ref[1:2, :].astype(jnp.float32)
        beta = p_ref[2:3, :].astype(jnp.float32)
        o_ref[...] = (norm * gamma + beta).astype(o_ref.dtype)

    if n_col_tiles == 1:
        # ---------- fused path: bf16 weight fully resident in VMEM -------------------
        x_in = x_ref[...]
        sub = jnp.dot(x_in.astype(jnp.bfloat16), w_ref[...],
                      preferred_element_type=jnp.float32)
        sub = sub + p_ref[0:1, :].astype(jnp.float32)           # bias
        sub = apply_dropout(sub)
        layernorm_store(x_in.astype(jnp.float32) + sub)
    else:
        # ---------- column-tiled path: W streamed in (D, tile_cols) blocks -----------
        acc_ref = scratch[0]
        j = pl.program_id(1)
        col0 = pl.multiple_of(j * tile_cols, 128)
        acc_ref[:, pl.ds(col0, tile_cols)] = jnp.dot(
            x_ref[...].astype(jnp.bfloat16), w_ref[...],
            preferred_element_type=jnp.float32)

        @pl.when(j == n_col_tiles - 1)
        def _():
            sub = acc_ref[...] + p_ref[0:1, :].astype(jnp.float32)
            sub = apply_dropout(sub)
            layernorm_store(x_ref[...].astype(jnp.float32) + sub)


def sublayer_wrapper(x, w, b, gamma, beta, *, dropout_r=0.1, seed=0, eps=1e-5,
                     tile_rows=512, vmem_limit_bytes=None):
    """x: (B, S, D). Returns LayerNorm(x + Dropout(x @ w + b)), same dtype as x.

    Works for f32 or bf16 activations (LN statistics always in f32).
    tile_rows: requested rows per grid step; the actual tile is derived from the VMEM
    budget (bigger tiles -> closer to the HBM roofline on the mem-bound streaming path).
    """
    B, S, D = x.shape
    assert D % 128 == 0, "pad d_model to a multiple of 128 for lane-dense stores"
    assert 0.0 <= dropout_r < 1.0
    rows = B * S
    x_itemsize = x.dtype.itemsize

    # ---- generation-aware VMEM budget --------------------------------------------------
    if vmem_limit_bytes is None:
        try:
            cap = int(pltpu.get_tpu_info().vmem_capacity_bytes)
        except Exception:
            cap = 64 * 1024 * 1024          # conservative fallback (v7x per-TC VMEM)
        vmem_limit_bytes = int(min(cap * 4 // 5, 100 * 1024 * 1024))
    vmem_limit_bytes = int(vmem_limit_bytes)

    # ---- weight column tile (tn): fully resident if it fits, otherwise streamed --------
    weight_budget = vmem_limit_bytes // 2
    if 2 * D * D <= weight_budget:
        tn = D                               # resident, single copy (Buffered(1))
    else:
        tn = 128                             # always divides D
        for cand in range(D - 128, 127, -128):
            # streamed blocks are double-buffered: 2 copies of (D, cand) bf16
            if D % cand == 0 and 2 * (2 * D * cand) <= weight_budget:
                tn = cand
                break
    n_col_tiles = D // tn

    # ---- row tile (tr): as big as the budget allows, >=2 tiles for v7x megacore --------
    const_bytes = (2 * D * tn) * (1 if n_col_tiles == 1 else 2) + 8 * D * 4
    per_row = 2 * D * x_itemsize             # x tile, double-buffered
    per_row += 2 * D * x_itemsize            # out tile, double-buffered
    per_row += 6 * D * 4                     # f32 intermediates (sub / dropout / LN)
    if n_col_tiles > 1:
        per_row += D * 4                     # f32 accumulation scratch
    avail = max(vmem_limit_bytes - const_bytes - (4 << 20), per_row * 8)
    tr = min(int(tile_rows), avail // per_row)
    tr = max(8, (tr // 8) * 8)
    tr = min(tr, ((rows + 7) // 8) * 8)
    if rows >= 16 and -(-rows // tr) < 2:    # guarantee >= 2 row tiles when possible
        tr = max(8, ((((rows + 1) // 2) + 7) // 8) * 8)
    n_row_tiles = -(-rows // tr)
    padded_rows = n_row_tiles * tr

    # ---- operands -----------------------------------------------------------------------
    x2 = x.reshape(rows, D)
    if padded_rows != rows:
        x2 = jnp.pad(x2, ((0, padded_rows - rows), (0, 0)))

    w_bf16 = w.astype(jnp.bfloat16)
    # bias / gamma / beta stacked into one (8, D) f32 operand (rows 0..2 used).
    params = jnp.zeros((8, D), jnp.float32)
    params = params.at[0].set(b.astype(jnp.float32))
    params = params.at[1].set(gamma.astype(jnp.float32))
    params = params.at[2].set(beta.astype(jnp.float32))
    seed_arr = jnp.array([seed], dtype=jnp.int32)

    kernel = functools.partial(_sublayer_wrapper_kernel,
                               float(dropout_r), float(eps), tr, tn, D, n_col_tiles)

    if n_col_tiles == 1:
        grid = (n_row_tiles,)
        in_specs = [
            pl.BlockSpec((tr, D), lambda i, s: (i, 0)),    # x rows (streamed)
            _const_spec((D, D), lambda i, s: (0, 0)),      # W (bf16, resident, 1 buffer)
            _const_spec((8, D), lambda i, s: (0, 0)),      # bias/gamma/beta (1 buffer)
        ]
        out_spec = pl.BlockSpec((tr, D), lambda i, s: (i, 0))
        scratch_shapes = []
        dim_sem = ("parallel",)
    else:
        grid = (n_row_tiles, n_col_tiles)
        in_specs = [
            pl.BlockSpec((tr, D), lambda i, j, s: (i, 0)),   # x rows (resident across j)
            pl.BlockSpec((D, tn), lambda i, j, s: (0, j)),   # W column blocks (streamed)
            _const_spec((8, D), lambda i, j, s: (0, 0)),     # bias/gamma/beta (1 buffer)
        ]
        out_spec = pl.BlockSpec((tr, D), lambda i, j, s: (i, 0))
        scratch_shapes = [pltpu.VMEM((tr, D), jnp.float32)]
        dim_sem = ("parallel", "arbitrary")

    out = pl.pallas_call(
        kernel,
        out_shape=jax.ShapeDtypeStruct((padded_rows, D), x.dtype),
        grid_spec=pltpu.PrefetchScalarGridSpec(
            num_scalar_prefetch=1,
            grid=grid,
            in_specs=in_specs,
            out_specs=out_spec,
            scratch_shapes=scratch_shapes,
        ),
        compiler_params=pltpu.CompilerParams(
            dimension_semantics=dim_sem,
            vmem_limit_bytes=vmem_limit_bytes,
        ),
    )(seed_arr, x2, w_bf16, params)

    if padded_rows != rows:
        out = out[:rows]
    return out.reshape(B, S, D)


def _reference_no_dropout(x, w, b, gamma, beta, eps=1e-5):
    # Mirrors the kernel's bf16-operand / f32-accumulate matmul.
    B, S, D = x.shape
    sub = jnp.dot(x.reshape(-1, D).astype(jnp.bfloat16), w.astype(jnp.bfloat16),
                  preferred_element_type=jnp.float32).reshape(B, S, D) + b
    resid = x.astype(jnp.float32) + sub
    mean = jnp.mean(resid, axis=-1, keepdims=True)
    var = jnp.mean((resid - mean) ** 2, axis=-1, keepdims=True)
    return (resid - mean) * jax.lax.rsqrt(var + eps) * gamma + beta


if __name__ == "__main__":
    # Small but lane-dense demo shape: batch=2, seq=8, d_model=128.
    B, S, D = 2, 8, 128
    key = jax.random.PRNGKey(0)
    kx, kw, kb = jax.random.split(key, 3)

    x = jax.random.normal(kx, (B, S, D), dtype=jnp.float32)
    w = jax.random.normal(kw, (D, D), dtype=jnp.float32) * (1.0 / math.sqrt(D))
    b = jax.random.normal(kb, (D,), dtype=jnp.float32) * 0.02
    gamma = jnp.ones((D,), dtype=jnp.float32)
    beta = jnp.zeros((D,), dtype=jnp.float32)

    # Correctness check with dropout disabled (deterministic path).
    out_nodrop = sublayer_wrapper(x, w, b, gamma, beta, dropout_r=0.0, seed=0)
    ref = _reference_no_dropout(x, w, b, gamma, beta)
    max_err = float(jnp.max(jnp.abs(out_nodrop - ref)))
    assert jnp.allclose(out_nodrop, ref, atol=2e-3, rtol=2e-3), f"max_err={max_err}"

    # Training-mode run with dropout_r=0.1 (in-kernel counter-based PRNG).
    out = sublayer_wrapper(x, w, b, gamma, beta, dropout_r=0.1, seed=1234)
    out = jax.block_until_ready(out)
    assert out.shape == (B, S, D)
    assert bool(jnp.all(jnp.isfinite(out)))

    # bf16 activation path (halves the HBM-bound x/out streams).
    out_bf16 = sublayer_wrapper(x.astype(jnp.bfloat16), w, b, gamma, beta,
                                dropout_r=0.1, seed=7)
    out_bf16 = jax.block_until_ready(out_bf16)
    assert out_bf16.shape == (B, S, D) and out_bf16.dtype == jnp.bfloat16
    assert bool(jnp.all(jnp.isfinite(out_bf16.astype(jnp.float32))))

    print("KERNEL_OK")
</pallas_src>

<mosaic_0001>
module attributes {stable_mosaic.version = 11 : i64} {
  func.func @_sublayer_wrapper_kernel(%arg0: i32, %arg1: memref<1xi32, #tpu.memory_space<smem>>, %arg2: memref<8x128xf32, #tpu.memory_space<vmem>>, %arg3: memref<128x128xbf16, #tpu.memory_space<vmem>>, %arg4: memref<8x128xf32, #tpu.memory_space<vmem>>, %arg5: memref<8x128xf32, #tpu.memory_space<vmem>>) attributes {dimension_semantics = [#tpu.dimension_semantics<parallel>], iteration_bounds = array<i64: 2>, scalar_prefetch = 1 : i64, scratch_operands = 0 : i64, tpu.core_type = #tpu.core_type<tc>, window_params = [{transform_indices = @transform_0, window_bounds = array<i64: 8, 128>}, {pipeline_mode = #tpu.pipeline_mode<synchronous>, transform_indices = @transform_1, window_bounds = array<i64: 128, 128>}, {pipeline_mode = #tpu.pipeline_mode<synchronous>, transform_indices = @transform_2, window_bounds = array<i64: 8, 128>}, {transform_indices = @transform_3, window_bounds = array<i64: 8, 128>}]} {
    %c0 = arith.constant 0 : index
    %c0_0 = arith.constant 0 : index
    %0 = vector.load %arg2[%c0, %c0_0] : memref<8x128xf32, #tpu.memory_space<vmem>>, vector<8x128xf32>
    %1 = arith.truncf %0 : vector<8x128xf32> to vector<8x128xbf16>
    %c0_1 = arith.constant 0 : index
    %c0_2 = arith.constant 0 : index
    %2 = vector.load %arg3[%c0_1, %c0_2] : memref<128x128xbf16, #tpu.memory_space<vmem>>, vector<128x128xbf16>
    %cst = arith.constant dense<0.000000e+00> : vector<8x128xf32>
    %3 = tpu.matmul %1, %2, %cst {dimension_numbers = #tpu.dot_dimension_numbers<[1], [0], [0], [1], [0, 0, 1, 1], [], []>} : vector<8x128xbf16>, vector<128x128xbf16>, vector<8x128xf32> -> vector<8x128xf32>
    %c0_3 = arith.constant 0 : index
    %c0_4 = arith.constant 0 : index
    %4 = vector.load %arg4[%c0_3, %c0_4] : memref<8x128xf32, #tpu.memory_space<vmem>>, vector<1x128xf32>
    %5 = vector.broadcast %4 : vector<1x128xf32> to vector<8x128xf32>
    %6 = arith.addf %3, %5 : vector<8x128xf32>
    %7 = arith.addf %0, %6 : vector<8x128xf32>
    %cst_5 = arith.constant dense<0.000000e+00> : vector<8xf32>
    %8 = vector.multi_reduction <add>, %7, %cst_5 [1] : vector<8x128xf32> to vector<8xf32>
    %9 = vector.shape_cast %8 : vector<8xf32> to vector<8x1xf32>
    %cst_6 = arith.constant 1.280000e+02 : f32
    %10 = vector.broadcast %cst_6 : f32 to vector<8x1xf32>
    %11 = arith.divf %9, %10 : vector<8x1xf32>
    %12 = vector.broadcast %11 : vector<8x1xf32> to vector<8x128xf32>
    %13 = arith.subf %7, %12 : vector<8x128xf32>
    %14 = arith.mulf %13, %13 : vector<8x128xf32>
    %cst_7 = arith.constant dense<0.000000e+00> : vector<8xf32>
    %15 = vector.multi_reduction <add>, %14, %cst_7 [1] : vector<8x128xf32> to vector<8xf32>
    %16 = vector.shape_cast %15 : vector<8xf32> to vector<8x1xf32>
    %cst_8 = arith.constant 1.280000e+02 : f32
    %17 = vector.broadcast %cst_8 : f32 to vector<8x1xf32>
    %18 = arith.divf %16, %17 : vector<8x1xf32>
    %19 = vector.broadcast %11 : vector<8x1xf32> to vector<8x128xf32>
    %20 = arith.subf %7, %19 : vector<8x128xf32>
    %cst_9 = arith.constant 9.99999974E-6 : f32
    %21 = vector.broadcast %cst_9 : f32 to vector<8x1xf32>
    %22 = arith.addf %18, %21 : vector<8x1xf32>
    %23 = math.rsqrt %22 : vector<8x1xf32>
    %24 = vector.broadcast %23 : vector<8x1xf32> to vector<8x128xf32>
    %25 = arith.mulf %20, %24 : vector<8x128xf32>
    %c1 = arith.constant 1 : index
    %c0_10 = arith.constant 0 : index
    %26 = vector.load %arg4[%c1, %c0_10] : memref<8x128xf32, #tpu.memory_space<vmem>>, vector<1x128xf32>
    %c2 = arith.constant 2 : index
    %c0_11 = arith.constant 0 : index
    %27 = vector.load %arg4[%c2, %c0_11] : memref<8x128xf32, #tpu.memory_space<vmem>>, vector<1x128xf32>
    %28 = vector.broadcast %26 : vector<1x128xf32> to vector<8x128xf32>
    %29 = arith.mulf %25, %28 : vector<8x128xf32>
    %30 = vector.broadcast %27 : vector<1x128xf32> to vector<8x128xf32>
    %31 = arith.addf %29, %30 : vector<8x128xf32>
    %c0_12 = arith.constant 0 : index
    %c0_13 = arith.constant 0 : index
    %32 = vector.load %arg5[%c0_12, %c0_13] : memref<8x128xf32, #tpu.memory_space<vmem>>, vector<8x128xf32>
    tpu.vector_store %arg5[%c0_12, %c0_13], %31 {strides = array<i32>} : memref<8x128xf32, #tpu.memory_space<vmem>>, vector<8x128xf32>,
    return
  }
  func.func @transform_0(%arg0: i32, %arg1: memref<1xi32, #tpu.memory_space<smem>>) -> (i32, i32) {
    %c0_i32 = arith.constant 0 : i32
    %c0_i32_0 = arith.constant 0 : i32
    return %arg0, %c0_i32 : i32, i32
  }
  func.func @transform_1(%arg0: i32, %arg1: memref<1xi32, #tpu.memory_space<smem>>) -> (i32, i32) {
    %c0_i32 = arith.constant 0 : i32
    %c0_i32_0 = arith.constant 0 : i32
    %c0_i32_1 = arith.constant 0 : i32
    return %c0_i32, %c0_i32_0 : i32, i32
  }
  func.func @transform_2(%arg0: i32, %arg1: memref<1xi32, #tpu.memory_space<smem>>) -> (i32, i32) {
    %c0_i32 = arith.constant 0 : i32
    %c0_i32_0 = arith.constant 0 : i32
    %c0_i32_1 = arith.constant 0 : i32
    return %c0_i32, %c0_i32_0 : i32, i32
  }
  func.func @transform_3(%arg0: i32, %arg1: memref<1xi32, #tpu.memory_space<smem>>) -> (i32, i32) {
    %c0_i32 = arith.constant 0 : i32
    %c0_i32_0 = arith.constant 0 : i32
    return %arg0, %c0_i32 : i32, i32
  }
}

</mosaic_0001>

<bundles_post_ra>
// kernel: tpu_custom_call.1
= control target key start
LH: loop header
LB: loop body
LE: loop exit
PB: predicated region body
PF: predicated region fallthrough
CT: control target
= control target key end

     0   :  { %10 = vsyncpa [#allocation5], 0  ;;  %s931_s0 = inlined_call_operand.<no memory space> [shape: s32[1], index: 0, kind: input, shape index: {}]   ;;  %s932_s1 = inlined_call_operand.hbm [shape: f32[16,128], index: 1, kind: input, shape index: {}]   ;;  %s933_s2 = inlined_call_operand.hbm [shape: bf16[128,128], index: 2, kind: input, shape index: {}]   ;;  %s934_s3 = inlined_call_operand.vmem [shape: f32[8,128], index: 3, kind: input, shape index: {}]   ;;  %s935_s4 = inlined_call_operand.hbm [shape: f32[16,128], index: 4, kind: output, shape index: {}]  }
   0x1   :  { %12 = vsyncpa [#allocation5 + $0x1], 0 }
   0x2   :  { %13 = vsyncpa [#allocation8], 0 }
   0x3   :  { %14 = vsyncpa [#allocation6], 0 }
   0x4   :  { %16 = vsyncpa [#allocation6 + $0x1], 0  ;;  %s722_s15 = smov 0   ;;  %s724_s0 = smov 0  }
   0x5   :  { %s726_s16 = smov 0   ;;  %s728_s17 = smov 0  }
   0x6 LB: > { %s743_s18 = sadd.s32 4294967295, %s688_s17   ;;  %s435_s19 = sadd.s32 4294967294, %s688_s17   ;;  %s688_s17 = sphi %s728_s17, %s955_s17   ;;  %s684_s16 = sphi %s726_s16, %s954_s16   ;;  %s680_s0 = sphi %s724_s0, %s953_s0   ;;  %s676_s15 = sphi %s722_s15, %s952_s15  }
   0x7   : > { %p42_p0 = scmp.ne.s32.totalorder %s680_s0, %s676_s15  ;;  %p936_p1 = scmp.eq.s32.totalorder %s743_s18, 0 }
   0x8   : > { %p114_p3 = scmp.eq.s32.totalorder %s435_s19, 1  ;;  %p436_p5 = scmp.ge.s32.totalorder %s688_s17, 1 }
   0x9   : > { %p752_p4 = por %p936_p1, %p42_p0  ;;  %p121_p7 = scmp.lt.s32.totalorder %s688_s17, 3 }
   0xa   : > { %p757_p6 = por %p114_p3, %p42_p0  ;;  %s690_s23 = smov [#allocation7]  }
   0xb   : > { %s939_s20 = scalar_select %p752_p4, 1, 0 }
   0xc   : > { %s940_s21 = scalar_select %p757_p6, 1, 0 }
   0xd   : > { %p762_p8 = pnand %p436_p5, %p121_p7  ;;  %s133_s24 = sshll.u32 %s690_s23, 4  ;;  %s766_s24 = int_to_ptr.vmem [resolvable:$true] %s133_s24 }
   0xe   : > { %s778_s26 = sadd.s32 1, %s688_s17   ;;  %s29_s27 = sadd.s32 1, %s684_s16 }
   0xf   : > { %s941_s22 = scalar_select %p762_p8, 1, 0 }
  0x10   : > { %p497_p9 = pneg %p762_p8  ;;  %s26_s28 = ssub.s32 %s688_s17, %s778_s26 }
  0x11   : > { %s560_s5 = scalar_lea.hbm %s933_s2, 1024 }
  0x12   : > { %p773_p11 = pnand %p497_p9, %p936_p1  ;;  %p561_p12 = scmp.ne.s32.totalorder %s933_s2, %s560_s5 }
  0x13   : > { %p567_p5 = scmp.lt.u32.totalorder %s560_s5, %s933_s2 }
  0x14   : > { %p562_p13 = pneg %p773_p11 }
  0x16   : > { %p563_p0 = pnand %p562_p13, %p561_p12 }
  0x18   : > { %p564_p3 = pneg %p563_p0 }
  0x1a   : > { %p569_p7 = pnand %p567_p5, %p564_p3 }
  0x1c   : > { %572 = shalt.err (!%p569_p7)
}
  0x1d   : > { %s573_s10 = scalar_lea.vmem %s766_s24, 1024  ;;  %p581_p2 = scmp.lt.s32.totalorder %s766_s24, %s766_s24 }
  0x1e   : > { %p574_p9 = scmp.ne.s32.totalorder %s766_s24, %s573_s10  ;;  %p582_p6 = scmp.lt.s32.totalorder %s573_s10, %s573_s10 }
  0x20   : > { %p576_p10 = pnand %p574_p9, %p562_p13  ;;  %p583_p4 = por %p582_p6, %p581_p2 }
  0x22   : > { %p577_p1 = pneg %p576_p10 }
  0x24   : > { %p584_p8 = pnand %p583_p4, %p577_p1 }
  0x26   : > { %587 = shalt.err (!%p584_p8)
}
  0x27   : > { %s691_s11 = smov 64   ;;  %s692_s12 = smov 4  }
  0x28   : > { %500 = dma.hbm_to_vmem [thread:$0]  (!%p773_p11), %s933_s2, 1024, %s766_s24, [#allocation8], %s691_s11, %s691_s11, %s692_s12  }
  0x29   : > { %p27_p2 = scmp.eq.s32.totalorder %s26_s28, 0  ;;  %p36_p1 = scmp.ne.s32.totalorder %s684_s16, %s680_s0 }
  0x2a   : > { %p37_p4 = scmp.eq.s32.totalorder %s688_s17, 0  ;;  %p510_p6 = scmp.lt.s32.totalorder %s688_s17, 2 }
  0x2b   : > { %s809_s19 = scalar_select %p27_p2, %s684_s16, %s29_s27  }
  0x2c   : > { %p38_p8 = por %p37_p4, %p36_p1  ;;  %p943_p10 = scmp.eq.s32.totalorder %s743_s18, 1 }
  0x2d   : > { %s150_s29 = sand.u32 1, %s684_s16   ;;  %s440_s30 = sshll.u32 %s688_s17, 7 }
  0x2e   : > { %p813_p12 = por %p943_p10, %p36_p1  ;;  %s439_s5 = sshll.u32 %s150_s29, 3 }
  0x2f   : > { %s822_s7 = scalar_lea.hbm %s932_s1, %s440_s30  ;;  %s154_s24 = scalar_lea.vmem [#allocation4], %s439_s5 }
  0x30   : > { %s161_s27 = sshll.u32 %s154_s24, 4  ;;  %p824_p11 = pnand %p510_p6, %p38_p8  ;;  %s828_s27 = int_to_ptr.vmem [resolvable:$true] %s161_s27 }
  0x31   : > { %s151_s8 = scalar_lea.sflag [#allocation5], %s150_s29  ;;  %s588_s9 = scalar_lea.hbm %s822_s7, 128 }
  0x32   : > { %p589_p13 = scmp.ne.s32.totalorder %s822_s7, %s588_s9  ;;  %p590_p0 = pneg %p824_p11 }
  0x33   : > { %s593_s12 = scalar_lea.hbm %s932_s1, 256  ;;  %p594_p7 = scmp.lt.u32.totalorder %s822_s7, %s932_s1 }
  0x34   : > { %p591_p3 = pnand %p590_p0, %p589_p13  ;;  %p595_p9 = scmp.lt.u32.totalorder %s593_s12, %s588_s9 }
  0x35   : > { %p597_p1 = scmp.lt.u32.totalorder %s588_s9, %s822_s7 }
  0x36   : > { %p592_p5 = pneg %p591_p3  ;;  %p596_p2 = por %p595_p9, %p594_p7 }
  0x38   : > { %p598_p4 = por %p597_p1, %p596_p2 }
  0x3a   : > { %p599_p6 = pnand %p598_p4, %p592_p5 }
  0x3c   : > { %602 = shalt.err (!%p599_p6)
}
  0x3d   : > { %s603_s29 = scalar_lea.vmem %s828_s27, 128  ;;  %s693_s30 = smov [#allocation4]  }
  0x3e   : > { %p604_p8 = scmp.ne.s32.totalorder %s828_s27, %s603_s29  ;;  %s608_s5 = sshll.u32 %s693_s30, 4  ;;  %s609_s5 = int_to_ptr.vmem [resolvable:$false] %s608_s5 }
  0x3f   : > { %s610_s25 = scalar_lea.vmem %s609_s5, 256  ;;  %p611_p3 = scmp.lt.s32.totalorder %s828_s27, %s609_s5 }
  0x40   : > { %p606_p10 = pnand %p604_p8, %p590_p0  ;;  %p612_p7 = scmp.lt.s32.totalorder %s610_s25, %s603_s29 }
  0x42   : > { %p607_p13 = pneg %p606_p10  ;;  %p613_p9 = por %p612_p7, %p611_p3 }
  0x44   : > { %p614_p2 = pnand %p613_p9, %p607_p13 }
  0x46   : > { %617 = shalt.err (!%p614_p2)
}
  0x47   : > { %504 = dma.hbm_to_vmem [thread:$0]  (!%p824_p11), %s822_s7, 128, %s828_s27, %s151_s8  }
  0x48   : > { %p946_p5 = scmp.ne.s32.totalorder %s941_s22, 0 }
  0x49   : > { %s858_s6 = sand.u32 (!%p946_p5), 1, %s680_s0   ;;  %p947_p0 = scmp.ne.s32.totalorder (!%p946_p5), %s939_s20, 0 }
  0x4a   : > { %170 = sbr.rel (%p946_p5) target bundleno = 659 (0x293), region = 32  ;;  %s442_s24 = sshll.u32 (!%p946_p5), %s858_s6, 3 }
  0x4b   : > { %s173_s9 = scalar_lea.sflag (!%p946_p5), [#allocation5], %s858_s6  ;;  %s176_s10 = scalar_lea.vmem (!%p946_p5), [#allocation4], %s442_s24 }
  0x51   : > { %663 = dma.done.wait (%p947_p0), %s173_s9, 128  }
  0x52   : > { %665 = vsyncadd (%p947_p0), %s173_s9, 4294967168  ;;  %p948_p11 = scmp.eq.s32.totalorder %s743_s18, 0 }
  0x54   : > { %667 = dma.done.wait (%p948_p11), [#allocation8], 1024   ;;  %p949_p1 = pmov %p948_p11 }
  0x55   : > { %v694_v0 = vmov 0.0   ;;  %vm695_vm0 = vmmov 0   ;;  %v550_v1 = vld [vmem:[#allocation7] sm:$0xff]   ;;  %v551_v2 = vld [vmem:[#allocation7 + $0x8] sm:$0xff]   ;;  %v552_v3 = vld [vmem:[#allocation7 + $0x10] sm:$0xff]   ;;  %s457_s11 = sshll.u32 %s743_s18, 7 }
  0x56   : > { %669 = vsyncadd (%p949_p1), [#allocation8], 4294966272  ;;  %469 = vmatprep.subr.bf16.mxu0 %v694_v0  ;;  %485 = vmatprep.mubr.msk.bf16.mxu0 %vm695_vm0, %v694_v0  ;;  %v553_v4 = vld [vmem:[#allocation7 + $0x18] sm:$0xff]   ;;  %v554_v5 = vld [vmem:[#allocation7 + $0x20] sm:$0xff]   ;;  %s202_s12 = scalar_lea.vmem [#allocation9], %s442_s24  ;;  %s887_s30 = scalar_lea.hbm %s935_s4, %s457_s11 }
  0x57   : > { %470 = vmatpush3.bf16.msra.mxu0 %v550_v1  ;;  %v555_v6 = vld [vmem:[#allocation7 + $0x28] sm:$0xff]   ;;  %v556_v7 = vld [vmem:[#allocation7 + $0x30] sm:$0xff]   ;;  %v557_v8 = vld [vmem:[#allocation7 + $0x38] sm:$0xff]   ;;  %s355_s13 = sshll.u32 %s202_s12, 4  ;;  %s342_s5 = scalar_lea.sflag [#allocation6], %s858_s6  ;;  %s889_s13 = int_to_ptr.vmem [resolvable:$true] %s355_s13 }
  0x58   : > { %471 = vmatprep.subr.bf16.mxu0 %v694_v0  ;;  %v204_v9 = vld [vmem:[%s176_s10] sm:$0xff]  ;;  %s618_s25 = scalar_lea.vmem %s889_s13, 128  ;;  %s696_s18 = smov [#allocation9]  }
  0x59   : > { %v205_v10 = vpack.c.bf16 %v204_v9, %v204_v9  ;;  %v445_v11 = vld [vmem:[%s934_s3] ss:$0 sm:$0xff]  ;;  %v454_v26 = vld [vmem:[%s934_s3 + $0x1] ss:$0 sm:$0xff]  ;;  %v455_v28 = vld [vmem:[%s934_s3 + $0x2] ss:$0 sm:$0xff]  ;;  %p619_p4 = scmp.ne.s32.totalorder %s889_s13, %s618_s25 }
  0x5a   : > { %s622_s24 = sshll.u32 %s696_s18, 4  ;;  %s623_s24 = int_to_ptr.vmem [resolvable:$false] %s622_s24 }
  0x5b   : > { %472 = vmatpush3.bf16.msra.mxu0 %v551_v2  ;;  %p620_p6 = pnand %p619_p4, %p813_p12  ;;  %s624_s9 = scalar_lea.vmem %s623_s24, 256 }
  0x5c   : > { %473 = vmatprep.subr.bf16.mxu0 %v694_v0  ;;  %p625_p10 = scmp.lt.s32.totalorder %s889_s13, %s623_s24  ;;  %p626_p13 = scmp.lt.s32.totalorder %s624_s9, %s618_s25 }
  0x5d   : > { %p621_p8 = pneg %p620_p6 }
  0x5e   : > { %p627_p3 = por %p626_p13, %p625_p10 }
  0x5f   : > { %474 = vmatpush3.bf16.msra.mxu0 %v552_v3 }
  0x60   : > { %475 = vmatprep.subr.bf16.mxu0 %v694_v0  ;;  %p628_p7 = pnand %p627_p3, %p621_p8 }
  0x63   : > { %476 = vmatpush3.bf16.msra.mxu0 %v553_v4 }
  0x64   : > { %477 = vmatprep.subr.bf16.mxu0 %v694_v0 }
  0x67   : > { %478 = vmatpush3.bf16.msra.mxu0 %v554_v5 }
  0x68   : > { %479 = vmatprep.subr.bf16.mxu0 %v694_v0 }
  0x6b   : > { %480 = vmatpush3.bf16.msra.mxu0 %v555_v6 }
  0x6c   : > { %481 = vmatprep.subr.bf16.mxu0 %v694_v0 }
  0x6f   : > { %482 = vmatpush3.bf16.msra.mxu0 %v556_v7 }
  0x70   : > { %483 = vmatprep.subr.bf16.mxu0 %v694_v0 }
  0x73   : > { %484 = vmatpush3.bf16.msra.mxu0 %v557_v8 }
  0x76   : > { %486 = vmatmul.mubr.bf16.vlgmr.msra.gmra.mrb[0].mxu0 %v205_v10 }
 0x149   : > { %v309_v12 = vpop.f32.mrb[0].mxu0 }
 0x14a   : > { %v310_v13 = vadd.f32 %v445_v11, %v309_v12  ;;  %v487_v14 = vpop.f32.mrb[1].mxu0 }
 0x14b   : > { %v312_v15 = vpop.f32.mrb[2].mxu0 }
 0x14c   : > { %v488_v16 = vpop.f32.mrb[3].mxu0  ;;  %v315_v17 = vadd.f32 %v310_v13, %v204_v9 }
 0x14e   : > { %316 = vadd.xlane.f32.xlu0 %v315_v17 }
 0x1db   : > { %v317_v18 = vpop.xlane.xlu0 %316 }
 0x1dc   : > { %v319_v19 = vmul.f32 0.0078125, %v317_v18 }
 0x1de   : > { %v320_v20 = vsub.f32 %v315_v17, %v319_v19 }
 0x1e0   : > { %v321_v21 = vmul.f32 %v320_v20, %v320_v20 }
 0x1e2   : > { %322 = vadd.xlane.f32.xlu0 %v321_v21 }
 0x26f   : > { %v323_v22 = vpop.xlane.xlu0 %322 }
 0x270   : > { %v324_v23 = vmul.f32 0.0078125, %v323_v22 }
 0x272   : > { %v325_v24 = vadd.f32 1e-05, %v324_v23 }
 0x274   : > { %558 = vrsqrt.f32 %v325_v24 }
 0x27e   : > { %v559_v25 = vpop.eup %558 }
 0x27f   : > { %v327_v27 = vmul.f32 %v559_v25, %v320_v20 }
 0x281   : > { %v334_v29 = vmul.f32 %v454_v26, %v327_v27 }
 0x283   : > { %v339_v30 = vadd.f32 %v455_v28, %v334_v29 }
 0x285   : > { %340 = vst [vmem:[%s202_s12] sm:$0xff] %v339_v30 }
 0x286   : > { %631 = shalt.err (!%p628_p7)
}
 0x287   : > { %s632_s6 = scalar_lea.hbm %s887_s30, 128  ;;  %s636_s22 = scalar_lea.hbm %s935_s4, 256 }
 0x288   : > { %p633_p9 = scmp.ne.s32.totalorder %s887_s30, %s632_s6  ;;  %p637_p0 = scmp.lt.u32.totalorder %s887_s30, %s935_s4 }
 0x289   : > { %p638_p11 = scmp.lt.u32.totalorder %s636_s22, %s632_s6  ;;  %p640_p4 = scmp.lt.u32.totalorder %s632_s6, %s887_s30 }
 0x28a   : > { %p634_p2 = pnand %p633_p9, %p813_p12 }
 0x28b   : > { %p639_p1 = por %p638_p11, %p637_p0 }
 0x28c   : > { %p635_p5 = pneg %p634_p2 }
 0x28d   : > { %p641_p6 = por %p640_p4, %p639_p1 }
 0x28f   : > { %p642_p8 = pnand %p641_p6, %p635_p5 }
 0x291   : > { %645 = shalt.err (!%p642_p8)
}
 0x292   : > { %495 = dma.vmem_to_hbm [thread:$0]  (%p813_p12), %s889_s13, 128, %s887_s30, %s342_s5  }
 0x293 PF: > { %s367_s28 = sand.u32 1, %s676_s15   ;;  %p950_p10 = scmp.ne.s32.totalorder %s940_s21, 0 }
 0x294   : > { %p951_p13 = scmp.ge.s32.totalorder %s688_s17, 2  ;;  %s368_s8 = scalar_lea.sflag [#allocation6], %s367_s28 }
 0x296   : > { %p506_p3 = pnand %p951_p13, %p950_p10 }
 0x298   : > { %671 = dma.done.wait (!%p506_p3), %s368_s8, 128  }
 0x299   : > { %673 = vsyncadd (!%p506_p3), %s368_s8, 4294967168  ;;  %p19_p7 = scmp.ge.s32.totalorder %s778_s26, 4   ;;  %s952_s15 = smov %s680_s0 }
 0x29a   : > { %s953_s0 = smov %s684_s16  ;;  %s954_s16 = smov %s809_s19 }
 0x29b   : > { %s955_s17 = smov %s778_s26  ;;  %21 = sbr.rel (!%p19_p7) target bundleno = 6 (0x6), region = 81 }
 0x2a2   :  { %373 = vsyncpa [#allocation5], 1 }
 0x2a3   :  { %375 = vsyncpa [#allocation5 + $0x1], 1 }
 0x2a4   :  { %376 = vsyncpa [#allocation8], 1 }
 0x2a5   :  { %377 = vsyncpa [#allocation6], 1 }
 0x2a6   :  { %379 = vsyncpa [#allocation6 + $0x1], 1 }

</bundles_post_ra>
